<compile_context>
chip_gen: v6e
topology: v6e:2x2x1
jax: 0.10.0
libtpu: 0.0.40
codegen_flags: <defaults>
</compile_context>

<pallas_src>
import functools

import jax
import jax.numpy as jnp
from jax.experimental import pallas as pl
from jax.experimental.pallas import tpu as pltpu


def _round_up(a, m):
    return (a + m - 1) // m * m


def _sub(n):   # sublane padding (f32 worst case)
    return max(_round_up(n, 8), 8)


def _lane(n):  # lane padding
    return max(_round_up(n, 128), 128)


def _moewnet_kernel(x_ref, w1_ref, b1_ref, w2_ref, b2_ref, w3_ref, b3_ref,
                    o_ref, *scratch, mxu_dtype, n_k, fc3_on_mxu):
    # fc1 partial product for this K-slice (transposed activations):
    #   W1[:, ks] @ x[:, ks]^T  -> (H1, TB)
    # A @ B^T expressed directly via dot_general (contract D with D) so no
    # host-side transposes are needed.
    part = jax.lax.dot_general(
        w1_ref[...].astype(mxu_dtype), x_ref[...].astype(mxu_dtype),
        (((1,), (1,)), ((), ())),
        preferred_element_type=jnp.float32)

    def tail(h1_pre):
        # Bias adds / sigmoids stay f32 (v5e has no bf16 VPU/EUP).
        h1t = jax.nn.sigmoid(h1_pre + b1_ref[...])             # (H1, TB)
        h2t = jnp.dot(w2_ref[...].astype(mxu_dtype), h1t.astype(mxu_dtype),
                      preferred_element_type=jnp.float32)
        h2t = jax.nn.sigmoid(h2t + b2_ref[...])                # (H2, TB)
        w3 = w3_ref[...].astype(jnp.float32)
        if fc3_on_mxu:
            # Large H2: 1xH2 @ H2xTB matvec on the (otherwise idle) MXU.
            o = jnp.dot(w3, h2t, preferred_element_type=jnp.float32)  # (1, TB)
        else:
            # Small H2: VPU broadcast-multiply + sublane reduce.
            o = jnp.sum(h2t * w3, axis=0, keepdims=True)              # (1, TB)
        # Lane-dense (1, TB) row -> unmasked vst.
        o_ref[...] = (o + b3_ref[...]).astype(o_ref.dtype)

    if n_k == 1:
        tail(part)
    else:
        acc_ref, = scratch
        k = pl.program_id(1)

        @pl.when(k == 0)
        def _():
            acc_ref[...] = part

        @pl.when(k > 0)
        def _():
            acc_ref[...] += part

        @pl.when(k == n_k - 1)
        def _():
            tail(acc_ref[...])


def moewnet_forward(x, params, *, mxu_dtype=jnp.bfloat16, tb_max=8192,
                    k_tile=None, fc3_on_mxu=None):
    """MOEWNet forward: sigmoid(fc1(x)) -> sigmoid(fc2) -> fc3, returns (B, 1).

    x: (B, D) float32 or bfloat16 (bf16 is streamed as-is; no wrapper cast).
    params (PyTorch nn.Linear (out, in) layout):
      w1 (H1, D), b1 (H1, 1), w2 (H2, H1), b2 (H2, 1), w3 (H2, 1), b3 (1, 1)
    mxu_dtype: dtype of the MXU inputs (w1/w2 stored in this dtype);
      accumulation, biases, sigmoids and fc3 stay f32.
    k_tile: force fc1 K-tile size (None = auto, only when w1 won't fit VMEM).
    fc3_on_mxu: force fc3 onto the MXU (None = auto, H2 >= 512).
    """
    B, D = x.shape
    w1, b1 = params["w1"], params["b1"]
    w2, b2 = params["w2"], params["b2"]
    w3, b3 = params["w3"], params["b3"]
    H1, H2 = w1.shape[0], w2.shape[0]

    w1 = w1.astype(mxu_dtype)
    w2 = w2.astype(mxu_dtype)
    b1 = b1.astype(jnp.float32)
    b2 = b2.astype(jnp.float32)
    w3 = w3.astype(jnp.float32)
    b3 = b3.astype(jnp.float32)

    isz_x = jnp.dtype(x.dtype).itemsize
    isz_w = jnp.dtype(w1.dtype).itemsize

    if fc3_on_mxu is None:
        fc3_on_mxu = H2 >= 512
    if fc3_on_mxu:
        w3 = w3.reshape(1, H2)          # row layout for a plain (1,H2)@(H2,TB)

    # ---- Per-generation VMEM budget --------------------------------------
    try:
        vmem_cap = int(pltpu.get_tpu_info().vmem_capacity_bytes)
    except Exception:
        vmem_cap = 64 * 1024 * 1024     # conservative (v7x per-TC VMEM)
    budget = int(0.45 * vmem_cap)       # keep total footprint well under cap

    # ---- fc1 K-tiling decision (w1 too large to keep resident) -----------
    if k_tile is not None:
        tk = int(k_tile)
    elif H1 * D * isz_w > 0.3 * budget and D > 128:
        tk = int(0.3 * budget / (2 * H1 * isz_w)) // 128 * 128
    else:
        tk = D
    if tk >= D:
        tk, d_pad, n_k = D, D, 1
    else:
        tk = max(128, tk // 128 * 128)
        d_pad = _round_up(D, tk)
        n_k = d_pad // tk

    # ---- Batch tile from the VMEM budget ----------------------------------
    # Resident weights are single-buffered (Buffered(1)); a K-tiled w1 is
    # streamed (double-buffered).
    w1_bufs = 2 if n_k > 1 else 1
    fixed = (w1_bufs * _sub(H1) * _lane(tk) * isz_w                 # w1
             + _sub(H2) * _lane(H1) * isz_w                         # w2
             + (_sub(H1) + 2 * _sub(H2) + 8) * 128 * 4)             # b1,b2,w3,b3
    per_col = (2 * _lane(tk) * isz_x                                # x (2 bufs)
               + 2 * 8 * 4                                          # out (2 bufs)
               + (_sub(H1) + _sub(H2)
                  + (_sub(H1) if n_k > 1 else 0)) * 4)              # h1t,h2t,acc
    tb = max(128, ((budget - fixed) // per_col) // 128 * 128)
    tb = min(tb, _round_up(tb_max, 128), _round_up(max(B, 1), 128))
    if B > 128:
        # >= 2 grid steps so the "parallel" batch axis spans both v7x TCs.
        tb = min(tb, _round_up((B + 1) // 2, 128))
    tb = max(tb, 128)

    b_pad = _round_up(B, tb)
    n_tiles = b_pad // tb

    pad_b, pad_d = b_pad - B, d_pad - D
    if pad_b or pad_d:
        x = jnp.pad(x, ((0, pad_b), (0, pad_d)))
    if pad_d:
        w1 = jnp.pad(w1, ((0, 0), (0, pad_d)))   # zero columns contribute 0

    # ---- Advisory cost estimate & compiler params --------------------------
    flops = int(2 * b_pad * (d_pad * H1 + H1 * H2 + H2))
    transcendentals = int(b_pad * (H1 + H2))     # one exp per sigmoid element
    bytes_accessed = int(b_pad * d_pad * isz_x
                         + (n_tiles if n_k > 1 else 1) * H1 * d_pad * isz_w
                         + H2 * H1 * isz_w
                         + (H1 + 2 * H2 + 1) * 4
                         + b_pad * 4)
    cost = pl.CostEstimate(flops=flops, transcendentals=transcendentals,
                           bytes_accessed=bytes_accessed)

    vmem_est = fixed + tb * per_col + 512 * 1024
    compiler_kwargs = dict(dimension_semantics=("parallel", "arbitrary"))
    if vmem_est > 16 * 1024 * 1024:
        # Generation-aware: never above 90% of physical VMEM (64 MiB/TC on
        # v7x), never below the 32 MiB v6e/v7x default scoped limit.
        compiler_kwargs["vmem_limit_bytes"] = int(
            min(0.9 * vmem_cap, max(vmem_est * 1.25, 33 * 1024 * 1024)))

    kernel = functools.partial(_moewnet_kernel, mxu_dtype=mxu_dtype, n_k=n_k,
                               fc3_on_mxu=fc3_on_mxu)
    scratch_shapes = [pltpu.VMEM((H1, tb), jnp.float32)] if n_k > 1 else []
    out_shape = jax.ShapeDtypeStruct((1, b_pad), jnp.float32)
    w3_shape = (1, H2) if fc3_on_mxu else (H2, 1)

    def run(buffered_weights):
        def const_spec(shape):
            if buffered_weights:
                return pl.BlockSpec(shape, lambda i, k: (0, 0),
                                    pipeline_mode=pl.Buffered(1))
            return pl.BlockSpec(shape, lambda i, k: (0, 0))

        w1_spec = (pl.BlockSpec((H1, tk), lambda i, k: (0, k)) if n_k > 1
                   else const_spec((H1, d_pad)))
        in_specs = [
            pl.BlockSpec((tb, tk), lambda i, k: (i, k)),   # x: streamed tiles
            w1_spec,                                       # w1: resident/K-streamed
            const_spec((H1, 1)),                           # b1
            const_spec((H2, H1)),                          # w2
            const_spec((H2, 1)),                           # b2
            const_spec(w3_shape),                          # w3
            const_spec((1, 1)),                            # b3
        ]
        return pl.pallas_call(
            kernel,
            out_shape=out_shape,
            grid_spec=pltpu.PrefetchScalarGridSpec(
                num_scalar_prefetch=0,
                grid=(n_tiles, n_k),
                in_specs=in_specs,
                out_specs=pl.BlockSpec((1, tb), lambda i, k: (0, i)),
                scratch_shapes=scratch_shapes),
            compiler_params=pltpu.CompilerParams(**compiler_kwargs),
            cost_estimate=cost,
        )(x, w1, b1, w2, b2, w3, b3)

    try:
        out = run(True)
    except Exception:
        # Compat fallback for jax versions without BlockSpec(pipeline_mode=...):
        # default double-buffered resident weights (correct, a bit more VMEM).
        out = run(False)

    return out[0, :B].reshape(B, 1)


def init_params(input_dim, key):
    """Deterministic init matching MOEWNet shapes, PyTorch (out, in) layout."""
    h1, h2 = input_dim // 2, input_dim // 4
    ks = jax.random.split(key, 6)

    def uinit(k, shape, fan_in):
        bound = 1.0 / jnp.sqrt(fan_in)
        return jax.random.uniform(k, shape, jnp.float32, -bound, bound)

    return {
        "w1": uinit(ks[0], (h1, input_dim), input_dim),
        "b1": uinit(ks[1], (h1, 1), input_dim),
        "w2": uinit(ks[2], (h2, h1), h1),
        "b2": uinit(ks[3], (h2, 1), h1),
        "w3": uinit(ks[4], (h2, 1), h2),   # fc3.weight (1, h2) stored as a column
        "b3": uinit(ks[5], (1, 1), h2),
    }


def moewnet_ref(x, p):
    h1 = jax.nn.sigmoid(x @ p["w1"].T + p["b1"].T)
    h2 = jax.nn.sigmoid(h1 @ p["w2"].T + p["b2"].T)
    return h2 @ p["w3"] + p["b3"]


if __name__ == "__main__":
    key = jax.random.PRNGKey(0)
    kx, kp, kx2, kp2, kx3, kp3 = jax.random.split(key, 6)

    # 1) Small case matching the module spec — exact f32 MXU path.
    batch, input_dim = 8, 32
    x = jax.random.normal(kx, (batch, input_dim), jnp.float32)
    params = init_params(input_dim, kp)
    ref = moewnet_ref(x, params)

    out_f32 = jax.block_until_ready(
        moewnet_forward(x, params, mxu_dtype=jnp.float32))
    assert out_f32.shape == (batch, 1)
    assert jnp.allclose(out_f32, ref, atol=1e-5, rtol=1e-5)

    # 2) Default path: bf16 weights on the MXU, f32 accumulation / epilogue.
    out_bf16 = jax.block_until_ready(moewnet_forward(x, params))
    assert jnp.allclose(out_bf16, ref, atol=5e-2, rtol=5e-2)

    # 3) Multi-tile (gridded) batch with padding; bf16 x streamed directly.
    batch2, input_dim2 = 300, 64
    x2 = jax.random.normal(kx2, (batch2, input_dim2), jnp.float32)
    params2 = init_params(input_dim2, kp2)
    ref2 = moewnet_ref(x2, params2)
    out2 = jax.block_until_ready(
        moewnet_forward(x2.astype(jnp.bfloat16), params2))
    assert out2.shape == (batch2, 1)
    assert jnp.allclose(out2, ref2, atol=5e-2, rtol=5e-2)

    # 4) Forced fc1 K-tiling (accumulator over the "arbitrary" K axis) and the
    #    MXU fc3 path, at small shapes for coverage; exact f32 MXU path.
    batch3, input_dim3 = 512, 256
    x3 = jax.random.normal(kx3, (batch3, input_dim3), jnp.float32)
    params3 = init_params(input_dim3, kp3)
    ref3 = moewnet_ref(x3, params3)
    out3 = jax.block_until_ready(
        moewnet_forward(x3, params3, mxu_dtype=jnp.float32,
                        k_tile=128, fc3_on_mxu=True))
    assert out3.shape == (batch3, 1)
    assert jnp.allclose(out3, ref3, atol=1e-4, rtol=1e-4)

    print("KERNEL_OK")
</pallas_src>

<mosaic_0001>
module attributes {stable_mosaic.version = 11 : i64} {
  func.func @_moewnet_kernel(%arg0: i32, %arg1: i32, %arg2: memref<128x32xf32, #tpu.memory_space<vmem>>, %arg3: memref<16x32xf32, #tpu.memory_space<vmem>>, %arg4: memref<16x1xf32, #tpu.memory_space<vmem>>, %arg5: memref<8x16xf32, #tpu.memory_space<vmem>>, %arg6: memref<8x1xf32, #tpu.memory_space<vmem>>, %arg7: memref<8x1xf32, #tpu.memory_space<vmem>>, %arg8: memref<1x1xf32, #tpu.memory_space<vmem>>, %arg9: memref<1x128xf32, #tpu.memory_space<vmem>>) attributes {dimension_semantics = [#tpu.dimension_semantics<parallel>, #tpu.dimension_semantics<arbitrary>], iteration_bounds = array<i64: 1, 1>, scalar_prefetch = 0 : i64, scratch_operands = 0 : i64, tpu.core_type = #tpu.core_type<tc>, window_params = [{transform_indices = @transform_0, window_bounds = array<i64: 128, 32>}, {pipeline_mode = #tpu.pipeline_mode<synchronous>, transform_indices = @transform_1, window_bounds = array<i64: 16, 32>}, {pipeline_mode = #tpu.pipeline_mode<synchronous>, transform_indices = @transform_2, window_bounds = array<i64: 16, 1>}, {pipeline_mode = #tpu.pipeline_mode<synchronous>, transform_indices = @transform_3, window_bounds = array<i64: 8, 16>}, {pipeline_mode = #tpu.pipeline_mode<synchronous>, transform_indices = @transform_4, window_bounds = array<i64: 8, 1>}, {pipeline_mode = #tpu.pipeline_mode<synchronous>, transform_indices = @transform_5, window_bounds = array<i64: 8, 1>}, {pipeline_mode = #tpu.pipeline_mode<synchronous>, transform_indices = @transform_6, window_bounds = array<i64: 1, 1>}, {transform_indices = @transform_7, window_bounds = array<i64: 1, 128>}]} {
    %c0 = arith.constant 0 : index
    %c0_0 = arith.constant 0 : index
    %0 = vector.load %arg3[%c0, %c0_0] : memref<16x32xf32, #tpu.memory_space<vmem>>, vector<16x32xf32>
    %c0_1 = arith.constant 0 : index
    %c0_2 = arith.constant 0 : index
    %1 = vector.load %arg2[%c0_1, %c0_2] : memref<128x32xf32, #tpu.memory_space<vmem>>, vector<128x32xf32>
    %cst = arith.constant dense<0.000000e+00> : vector<16x128xf32>
    %2 = tpu.matmul %0, %1, %cst {dimension_numbers = #tpu.dot_dimension_numbers<[1], [1], [0], [0], [0, 0, 1, 0], [], []>} : vector<16x32xf32>, vector<128x32xf32>, vector<16x128xf32> -> vector<16x128xf32>
    %c0_3 = arith.constant 0 : index
    %c0_4 = arith.constant 0 : index
    %3 = vector.load %arg4[%c0_3, %c0_4] : memref<16x1xf32, #tpu.memory_space<vmem>>, vector<16x1xf32>
    %4 = vector.broadcast %3 : vector<16x1xf32> to vector<16x128xf32>
    %5 = arith.addf %2, %4 : vector<16x128xf32>
    %6 = arith.negf %5 : vector<16x128xf32>
    %7 = math.exp %6 : vector<16x128xf32>
    %cst_5 = arith.constant 1.000000e+00 : f32
    %8 = vector.broadcast %cst_5 : f32 to vector<16x128xf32>
    %9 = arith.addf %8, %7 : vector<16x128xf32>
    %10 = arith.divf %8, %9 : vector<16x128xf32>
    %c0_6 = arith.constant 0 : index
    %c0_7 = arith.constant 0 : index
    %11 = vector.load %arg5[%c0_6, %c0_7] : memref<8x16xf32, #tpu.memory_space<vmem>>, vector<8x16xf32>
    %cst_8 = arith.constant dense<0.000000e+00> : vector<8x128xf32>
    %12 = tpu.matmul %11, %10, %cst_8 {dimension_numbers = #tpu.dot_dimension_numbers<[1], [0], [0], [1], [0, 0, 1, 1], [], []>} : vector<8x16xf32>, vector<16x128xf32>, vector<8x128xf32> -> vector<8x128xf32>
    %c0_9 = arith.constant 0 : index
    %c0_10 = arith.constant 0 : index
    %13 = vector.load %arg6[%c0_9, %c0_10] : memref<8x1xf32, #tpu.memory_space<vmem>>, vector<8x1xf32>
    %14 = vector.broadcast %13 : vector<8x1xf32> to vector<8x128xf32>
    %15 = arith.addf %12, %14 : vector<8x128xf32>
    %16 = arith.negf %15 : vector<8x128xf32>
    %17 = math.exp %16 : vector<8x128xf32>
    %cst_11 = arith.constant 1.000000e+00 : f32
    %18 = vector.broadcast %cst_11 : f32 to vector<8x128xf32>
    %19 = arith.addf %18, %17 : vector<8x128xf32>
    %20 = arith.divf %18, %19 : vector<8x128xf32>
    %c0_12 = arith.constant 0 : index
    %c0_13 = arith.constant 0 : index
    %21 = vector.load %arg7[%c0_12, %c0_13] : memref<8x1xf32, #tpu.memory_space<vmem>>, vector<8x1xf32>
    %22 = vector.broadcast %21 : vector<8x1xf32> to vector<8x128xf32>
    %23 = arith.mulf %20, %22 : vector<8x128xf32>
    %cst_14 = arith.constant dense<0.000000e+00> : vector<128xf32>
    %24 = vector.multi_reduction <add>, %23, %cst_14 [0] : vector<8x128xf32> to vector<128xf32>
    %25 = vector.shape_cast %24 : vector<128xf32> to vector<1x128xf32>
    %c0_15 = arith.constant 0 : index
    %c0_16 = arith.constant 0 : index
    %26 = vector.load %arg8[%c0_15, %c0_16] : memref<1x1xf32, #tpu.memory_space<vmem>>, vector<1x1xf32>
    %27 = vector.broadcast %26 : vector<1x1xf32> to vector<1x128xf32>
    %28 = arith.addf %25, %27 : vector<1x128xf32>
    %c0_17 = arith.constant 0 : index
    %c0_18 = arith.constant 0 : index
    %29 = vector.load %arg9[%c0_17, %c0_18] : memref<1x128xf32, #tpu.memory_space<vmem>>, vector<1x128xf32>
    tpu.vector_store %arg9[%c0_17, %c0_18], %28 {strides = array<i32>} : memref<1x128xf32, #tpu.memory_space<vmem>>, vector<1x128xf32>,
    return
  }
  func.func @transform_0(%arg0: i32, %arg1: i32) -> (i32, i32) {
    %c0_i32 = arith.constant 0 : i32
    return %arg0, %arg1 : i32, i32
  }
  func.func @transform_1(%arg0: i32, %arg1: i32) -> (i32, i32) {
    %c0_i32 = arith.constant 0 : i32
    %c0_i32_0 = arith.constant 0 : i32
    %c0_i32_1 = arith.constant 0 : i32
    return %c0_i32, %c0_i32_0 : i32, i32
  }
  func.func @transform_2(%arg0: i32, %arg1: i32) -> (i32, i32) {
    %c0_i32 = arith.constant 0 : i32
    %c0_i32_0 = arith.constant 0 : i32
    %c0_i32_1 = arith.constant 0 : i32
    return %c0_i32, %c0_i32_0 : i32, i32
  }
  func.func @transform_3(%arg0: i32, %arg1: i32) -> (i32, i32) {
    %c0_i32 = arith.constant 0 : i32
    %c0_i32_0 = arith.constant 0 : i32
    %c0_i32_1 = arith.constant 0 : i32
    return %c0_i32, %c0_i32_0 : i32, i32
  }
  func.func @transform_4(%arg0: i32, %arg1: i32) -> (i32, i32) {
    %c0_i32 = arith.constant 0 : i32
    %c0_i32_0 = arith.constant 0 : i32
    %c0_i32_1 = arith.constant 0 : i32
    return %c0_i32, %c0_i32_0 : i32, i32
  }
  func.func @transform_5(%arg0: i32, %arg1: i32) -> (i32, i32) {
    %c0_i32 = arith.constant 0 : i32
    %c0_i32_0 = arith.constant 0 : i32
    %c0_i32_1 = arith.constant 0 : i32
    return %c0_i32, %c0_i32_0 : i32, i32
  }
  func.func @transform_6(%arg0: i32, %arg1: i32) -> (i32, i32) {
    %c0_i32 = arith.constant 0 : i32
    %c0_i32_0 = arith.constant 0 : i32
    %c0_i32_1 = arith.constant 0 : i32
    return %c0_i32, %c0_i32_0 : i32, i32
  }
  func.func @transform_7(%arg0: i32, %arg1: i32) -> (i32, i32) {
    %c0_i32 = arith.constant 0 : i32
    %c0_i32_0 = arith.constant 0 : i32
    return %c0_i32, %arg0 : i32, i32
  }
}

module attributes {stable_mosaic.version = 11 : i64} {
  func.func @_moewnet_kernel(%arg0: i32, %arg1: i32, %arg2: memref<128x32xf32, #tpu.memory_space<vmem>>, %arg3: memref<16x32xf32, #tpu.memory_space<vmem>>, %arg4: memref<16x1xf32, #tpu.memory_space<vmem>>, %arg5: memref<8x16xf32, #tpu.memory_space<vmem>>, %arg6: memref<8x1xf32, #tpu.memory_space<vmem>>, %arg7: memref<8x1xf32, #tpu.memory_space<vmem>>, %arg8: memref<1x1xf32, #tpu.memory_space<vmem>>, %arg9: memref<1x128xf32, #tpu.memory_space<vmem>>) attributes {dimension_semantics = [#tpu.dimension_semantics<parallel>, #tpu.dimension_semantics<arbitrary>], iteration_bounds = array<i64: 1, 1>, scalar_prefetch = 0 : i64, scratch_operands = 0 : i64, tpu.core_type = #tpu.core_type<tc>, window_params = [{transform_indices = @transform_0, window_bounds = array<i64: 128, 32>}, {pipeline_mode = #tpu.pipeline_mode<synchronous>, transform_indices = @transform_1, window_bounds = array<i64: 16, 32>}, {pipeline_mode = #tpu.pipeline_mode<synchronous>, transform_indices = @transform_2, window_bounds = array<i64: 16, 1>}, {pipeline_mode = #tpu.pipeline_mode<synchronous>, transform_indices = @transform_3, window_bounds = array<i64: 8, 16>}, {pipeline_mode = #tpu.pipeline_mode<synchronous>, transform_indices = @transform_4, window_bounds = array<i64: 8, 1>}, {pipeline_mode = #tpu.pipeline_mode<synchronous>, transform_indices = @transform_5, window_bounds = array<i64: 8, 1>}, {pipeline_mode = #tpu.pipeline_mode<synchronous>, transform_indices = @transform_6, window_bounds = array<i64: 1, 1>}, {transform_indices = @transform_7, window_bounds = array<i64: 1, 128>}]} {
    %c0 = arith.constant 0 : index
    %c0_0 = arith.constant 0 : index
    %0 = vector.load %arg3[%c0, %c0_0] : memref<16x32xf32, #tpu.memory_space<vmem>>, vector<16x32xf32>
    %c0_1 = arith.constant 0 : index
    %c0_2 = arith.constant 0 : index
    %1 = vector.load %arg2[%c0_1, %c0_2] : memref<128x32xf32, #tpu.memory_space<vmem>>, vector<128x32xf32>
    %cst = arith.constant dense<0.000000e+00> : vector<16x128xf32>
    %2 = tpu.matmul %0, %1, %cst {dimension_numbers = #tpu.dot_dimension_numbers<[1], [1], [0], [0], [0, 0, 1, 0], [], []>} : vector<16x32xf32>, vector<128x32xf32>, vector<16x128xf32> -> vector<16x128xf32>
    %c0_3 = arith.constant 0 : index
    %c0_4 = arith.constant 0 : index
    %3 = vector.load %arg4[%c0_3, %c0_4] : memref<16x1xf32, #tpu.memory_space<vmem>>, vector<16x1xf32>
    %4 = vector.broadcast %3 : vector<16x1xf32> to vector<16x128xf32>
    %5 = arith.addf %2, %4 : vector<16x128xf32>
    %6 = arith.negf %5 : vector<16x128xf32>
    %7 = math.exp %6 : vector<16x128xf32>
    %cst_5 = arith.constant 1.000000e+00 : f32
    %8 = vector.broadcast %cst_5 : f32 to vector<16x128xf32>
    %9 = arith.addf %8, %7 : vector<16x128xf32>
    %10 = arith.divf %8, %9 : vector<16x128xf32>
    %c0_6 = arith.constant 0 : index
    %c0_7 = arith.constant 0 : index
    %11 = vector.load %arg5[%c0_6, %c0_7] : memref<8x16xf32, #tpu.memory_space<vmem>>, vector<8x16xf32>
    %cst_8 = arith.constant dense<0.000000e+00> : vector<8x128xf32>
    %12 = tpu.matmul %11, %10, %cst_8 {dimension_numbers = #tpu.dot_dimension_numbers<[1], [0], [0], [1], [0, 0, 1, 1], [], []>} : vector<8x16xf32>, vector<16x128xf32>, vector<8x128xf32> -> vector<8x128xf32>
    %c0_9 = arith.constant 0 : index
    %c0_10 = arith.constant 0 : index
    %13 = vector.load %arg6[%c0_9, %c0_10] : memref<8x1xf32, #tpu.memory_space<vmem>>, vector<8x1xf32>
    %14 = vector.broadcast %13 : vector<8x1xf32> to vector<8x128xf32>
    %15 = arith.addf %12, %14 : vector<8x128xf32>
    %16 = arith.negf %15 : vector<8x128xf32>
    %17 = math.exp %16 : vector<8x128xf32>
    %cst_11 = arith.constant 1.000000e+00 : f32
    %18 = vector.broadcast %cst_11 : f32 to vector<8x128xf32>
    %19 = arith.addf %18, %17 : vector<8x128xf32>
    %20 = arith.divf %18, %19 : vector<8x128xf32>
    %c0_12 = arith.constant 0 : index
    %c0_13 = arith.constant 0 : index
    %21 = vector.load %arg7[%c0_12, %c0_13] : memref<8x1xf32, #tpu.memory_space<vmem>>, vector<8x1xf32>
    %22 = vector.broadcast %21 : vector<8x1xf32> to vector<8x128xf32>
    %23 = arith.mulf %20, %22 : vector<8x128xf32>
    %cst_14 = arith.constant dense<0.000000e+00> : vector<128xf32>
    %24 = vector.multi_reduction <add>, %23, %cst_14 [0] : vector<8x128xf32> to vector<128xf32>
    %25 = vector.shape_cast %24 : vector<128xf32> to vector<1x128xf32>
    %c0_15 = arith.constant 0 : index
    %c0_16 = arith.constant 0 : index
    %26 = vector.load %arg8[%c0_15, %c0_16] : memref<1x1xf32, #tpu.memory_space<vmem>>, vector<1x1xf32>
    %27 = vector.broadcast %26 : vector<1x1xf32> to vector<1x128xf32>
    %28 = arith.addf %25, %27 : vector<1x128xf32>
    %c0_17 = arith.constant 0 : index
    %c0_18 = arith.constant 0 : index
    %29 = vector.load %arg9[%c0_17, %c0_18] : memref<1x128xf32, #tpu.memory_space<vmem>>, vector<1x128xf32>
    tpu.vector_store %arg9[%c0_17, %c0_18], %28 {strides = array<i32>} : memref<1x128xf32, #tpu.memory_space<vmem>>, vector<1x128xf32>,
    return
  }
  func.func @transform_0(%arg0: i32, %arg1: i32) -> (i32, i32) {
    %c0_i32 = arith.constant 0 : i32
    return %arg0, %arg1 : i32, i32
  }
  func.func @transform_1(%arg0: i32, %arg1: i32) -> (i32, i32) {
    %c0_i32 = arith.constant 0 : i32
    %c0_i32_0 = arith.constant 0 : i32
    %c0_i32_1 = arith.constant 0 : i32
    return %c0_i32, %c0_i32_0 : i32, i32
  }
  func.func @transform_2(%arg0: i32, %arg1: i32) -> (i32, i32) {
    %c0_i32 = arith.constant 0 : i32
    %c0_i32_0 = arith.constant 0 : i32
    %c0_i32_1 = arith.constant 0 : i32
    return %c0_i32, %c0_i32_0 : i32, i32
  }
  func.func @transform_3(%arg0: i32, %arg1: i32) -> (i32, i32) {
    %c0_i32 = arith.constant 0 : i32
    %c0_i32_0 = arith.constant 0 : i32
    %c0_i32_1 = arith.constant 0 : i32
    return %c0_i32, %c0_i32_0 : i32, i32
  }
  func.func @transform_4(%arg0: i32, %arg1: i32) -> (i32, i32) {
    %c0_i32 = arith.constant 0 : i32
    %c0_i32_0 = arith.constant 0 : i32
    %c0_i32_1 = arith.constant 0 : i32
    return %c0_i32, %c0_i32_0 : i32, i32
  }
  func.func @transform_5(%arg0: i32, %arg1: i32) -> (i32, i32) {
    %c0_i32 = arith.constant 0 : i32
    %c0_i32_0 = arith.constant 0 : i32
    %c0_i32_1 = arith.constant 0 : i32
    return %c0_i32, %c0_i32_0 : i32, i32
  }
  func.func @transform_6(%arg0: i32, %arg1: i32) -> (i32, i32) {
    %c0_i32 = arith.constant 0 : i32
    %c0_i32_0 = arith.constant 0 : i32
    %c0_i32_1 = arith.constant 0 : i32
    return %c0_i32, %c0_i32_0 : i32, i32
  }
  func.func @transform_7(%arg0: i32, %arg1: i32) -> (i32, i32) {
    %c0_i32 = arith.constant 0 : i32
    %c0_i32_0 = arith.constant 0 : i32
    return %c0_i32, %arg0 : i32, i32
  }
}

</mosaic_0001>

<bundles_post_ra>
// kernel: tpu_custom_call.1
= control target key start
LH: loop header
LB: loop body
LE: loop exit
PB: predicated region body
PF: predicated region fallthrough
CT: control target
= control target key end

     0   :  { %s605_s0 = inlined_call_operand.vmem [shape: f32[128,32], index: 0, kind: input, shape index: {}]   ;;  %s606_s1 = inlined_call_operand.vmem [shape: f32[16,32], index: 1, kind: input, shape index: {}]   ;;  %s607_s2 = inlined_call_operand.vmem [shape: f32[16,1], index: 2, kind: input, shape index: {}]   ;;  %s608_s3 = inlined_call_operand.vmem [shape: f32[8,16], index: 3, kind: input, shape index: {}]   ;;  %s609_s4 = inlined_call_operand.vmem [shape: f32[8,1], index: 4, kind: input, shape index: {}]   ;;  %s610_s5 = inlined_call_operand.vmem [shape: f32[8,1], index: 5, kind: input, shape index: {}]   ;;  %s611_s6 = inlined_call_operand.<no memory space> [shape: f32[1,1], index: 6, kind: input, shape index: {}]   ;;  %s612_s7 = inlined_call_operand.hbm [shape: f32[1,128], index: 7, kind: output, shape index: {}]  }
   0x1   :  { %v12_v0 = vstv %s611_s6 }
   0x2   :  { %13 = vst [vmem:[#allocation2] sm:$0x1] %v12_v0 }
   0x3   :  { %v46_v1 = vld [vmem:[%s605_s0 + $0x78] sm:$0xff]  ;;  %vm59_vm0 = vcmask 261120   ;;  %v45_v2 = vld [vmem:[%s605_s0 + $0x70] sm:$0xff]  ;;  %v452_v3 = vmov 0   ;;  %v44_v4 = vld [vmem:[%s605_s0 + $0x68] sm:$0xff] }
   0x4   :  { %370 = vmatprep.subr.msk.mxu0 %vm59_vm0, %v46_v1  ;;  %416 = vset.pattern.permute.xlu0 %v452_v3  ;;  %v29_v5 = vld [vmem:[%s606_s1] sm:$0xff]  ;;  %v48_v6 = vld [vmem:[%s607_s2 + $0x8] sm:$0xff] }
   0x5   :  { %371 = vmatpush3.xpose.msk.msra.mxu0 %vm59_vm0, %v46_v1  ;;  %417 = vset.pattern.permute.xlu1 %v452_v3 }
   0x6   :  { %372 = vmatprep.subr.msk.mxu0 %vm59_vm0, %v45_v2  ;;  %402 = vmatprep.mubr.msk.f32.mxu0 %vm59_vm0, %v29_v5 }
   0x7   :  { %56 = vperm.xlu0 %416, %v48_v6  }
   0x9   :  { %373 = vmatpush3.xpose.msk.msra.mxu0 %vm59_vm0, %v45_v2 }
   0xa   :  { %374 = vmatprep.subr.msk.mxu0 %vm59_vm0, %v44_v4 }
   0xb   :  { %14 = vsyncpa [#allocation4], 0  ;;  %v43_v7 = vld [vmem:[%s605_s0 + $0x60] sm:$0xff]  ;;  %v42_v9 = vld [vmem:[%s605_s0 + $0x58] sm:$0xff]  ;;  %v453_v23 = vmov 0.0   ;;  %vm454_vm1 = vmmov 0   ;;  %v307_v50 = vlaneseq }
   0xc   :  { %v47_v8 = vld [vmem:[%s607_s2] sm:$0xff]  ;;  %v41_v11 = vld [vmem:[%s605_s0 + $0x50] sm:$0xff]  ;;  %v40_v12 = vld [vmem:[%s605_s0 + $0x48] sm:$0xff]  ;;  %405 = vmatprep.subr.mxu1 %v453_v23  ;;  %409 = vmatprep.mubr.msk.f32.mxu1 %vm454_vm1, %v453_v23  ;;  %vm208_vm2 = vcmask 130048  }
   0xd   :  { %375 = vmatpush3.xpose.msk.msra.mxu0 %vm59_vm0, %v44_v4  ;;  %51 = vperm.xlu0 %416, %v47_v8   ;;  %v301_v10 = vld [vmem:[#allocation2] sm:$0x1]  ;;  %v38_v14 = vld [vmem:[%s605_s0 + $0x38] sm:$0xff]  ;;  %v37_v15 = vld [vmem:[%s605_s0 + $0x30] sm:$0xff]  ;;  %v308_v53 = vshrl.u32 %v307_v50, 7 }
   0xe   :  { %376 = vmatprep.subr.msk.mxu0 %vm59_vm0, %v43_v7  ;;  %v39_v13 = vld [vmem:[%s605_s0 + $0x40] sm:$0xff]  ;;  %v36_v16 = vld [vmem:[%s605_s0 + $0x28] sm:$0xff]  ;;  %v34_v18 = vld [vmem:[%s605_s0 + $0x18] sm:$0xff] }
   0xf   :  { %v35_v17 = vld [vmem:[%s605_s0 + $0x20] sm:$0xff]  ;;  %v33_v19 = vld [vmem:[%s605_s0 + $0x10] sm:$0xff]  ;;  %v32_v20 = vld [vmem:[%s605_s0 + $0x8] sm:$0xff]  ;;  %v309_v56 = vsub.s32 0, %v308_v53 }
  0x10   :  { %v31_v21 = vld [vmem:[%s605_s0] sm:$0xff]  ;;  %v30_v22 = vld [vmem:[%s606_s1 + $0x8] sm:$0xff] }
  0x11   :  { %377 = vmatpush3.xpose.msk.msra.mxu0 %vm59_vm0, %v43_v7  ;;  %304 = vperm.xlu0 %416, %v301_v10   ;;  %v202_v24 = vld [vmem:[%s609_s4] sm:$0xff] }
  0x12   :  { %378 = vmatprep.subr.msk.mxu0 %vm59_vm0, %v42_v9  ;;  %205 = vperm.xlu1 %417, %v202_v24   ;;  %v288_v25 = vld [vmem:[%s610_s5] sm:$0xff] }
  0x13   :  { %v201_v39 = vld [vmem:[%s608_s3] sm:$0xff]  ;;  %s455_s3 = smov [#allocation3]  }
  0x14   :  { %s319_s5 = sshll.u32 %s455_s3, 4  ;;  %s320_s5 = int_to_ptr.vmem [resolvable:$true] %s319_s5 }
  0x15   :  { %379 = vmatpush3.xpose.msk.msra.mxu0 %vm59_vm0, %v42_v9  ;;  %s430_s2 = scalar_lea.vmem %s320_s5, 16  ;;  %s434_s20 = scalar_lea.vmem %s320_s5, 32 }
  0x16   :  { %380 = vmatprep.subr.msk.mxu0 %vm59_vm0, %v41_v11  ;;  %291 = vperm.xlu1 %417, %v288_v25   ;;  %p431_p0 = scmp.ne.s32.totalorder %s320_s5, %s430_s2  ;;  %p435_p1 = scmp.lt.s32.totalorder %s320_s5, %s320_s5 }
  0x17   :  { %p436_p2 = scmp.lt.s32.totalorder %s434_s20, %s430_s2 }
  0x19   :  { %381 = vmatpush3.xpose.msk.msra.mxu0 %vm59_vm0, %v41_v11  ;;  %p437_p3 = por %p436_p2, %p435_p1 }
  0x1a   :  { %382 = vmatprep.subr.msk.mxu0 %vm59_vm0, %v40_v12 }
  0x1b   :  { %p438_p4 = pnand %p437_p3, %p431_p0 }
  0x1d   :  { %383 = vmatpush3.xpose.msk.msra.mxu0 %vm59_vm0, %v40_v12 }
  0x1e   :  { %384 = vmatprep.subr.msk.mxu0 %vm59_vm0, %v39_v13 }
  0x21   :  { %385 = vmatpush3.xpose.msk.msra.mxu0 %vm59_vm0, %v39_v13 }
  0x22   :  { %386 = vmatprep.subr.msk.mxu0 %vm59_vm0, %v38_v14 }
  0x25   :  { %387 = vmatpush3.xpose.msk.msra.mxu0 %vm59_vm0, %v38_v14 }
  0x26   :  { %388 = vmatprep.subr.msk.mxu0 %vm59_vm0, %v37_v15 }
  0x29   :  { %389 = vmatpush3.xpose.msk.msra.mxu0 %vm59_vm0, %v37_v15 }
  0x2a   :  { %390 = vmatprep.subr.msk.mxu0 %vm59_vm0, %v36_v16 }
  0x2d   :  { %391 = vmatpush3.xpose.msk.msra.mxu0 %vm59_vm0, %v36_v16 }
  0x2e   :  { %392 = vmatprep.subr.msk.mxu0 %vm59_vm0, %v35_v17 }
  0x31   :  { %393 = vmatpush3.xpose.msk.msra.mxu0 %vm59_vm0, %v35_v17 }
  0x32   :  { %394 = vmatprep.subr.msk.mxu0 %vm59_vm0, %v34_v18 }
  0x35   :  { %395 = vmatpush3.xpose.msk.msra.mxu0 %vm59_vm0, %v34_v18 }
  0x36   :  { %396 = vmatprep.subr.msk.mxu0 %vm59_vm0, %v33_v19 }
  0x39   :  { %397 = vmatpush3.xpose.msk.msra.mxu0 %vm59_vm0, %v33_v19 }
  0x3a   :  { %398 = vmatprep.subr.msk.mxu0 %vm59_vm0, %v32_v20 }
  0x3d   :  { %399 = vmatpush3.xpose.msk.msra.mxu0 %vm59_vm0, %v32_v20 }
  0x3e   :  { %400 = vmatprep.subr.msk.mxu0 %vm59_vm0, %v31_v21 }
  0x41   :  { %401 = vmatpush3.xpose.msk.msra.mxu0 %vm59_vm0, %v31_v21 }
  0x44   :  { %403 = vmatmul.mubr.msk.f32.vlgmr.msra.gmra.mxu0 %vm59_vm0, %v30_v22 }
  0x82   :  { %v57_v26 = vpop.permute.xlu0 %56 }
  0x88   :  { %v52_v29 = vpop.permute.xlu0 %51 }
  0x8c   :  { %v305_v58 = vpop.permute.xlu0 %304 }
  0x8d   :  { %v206_v41 = vpop.permute.xlu1 %205  ;;  %v310_v60 = vrot.slane %v305_v58, %v309_v56 }
  0x91   :  { %v292_v49 = vpop.permute.xlu1 %291 }
 0x104   :  { %v404_v27 = vpop.f32.mrf.mxu0 }
 0x105   :  { %v186_v28 = vadd.f32 %v404_v27, %v57_v26 }
 0x106   :  { %v180_v30 = vpop.f32.mrf.mxu0 }
 0x107   :  { %v346_v31 = vmul.f32 -1.442695, %v186_v28  ;;  %v181_v32 = vadd.f32 %v180_v30, %v52_v29 }
 0x109   :  { %418 = vpow2.f32 %v346_v31  ;;  %v345_v33 = vmul.f32 -1.442695, %v181_v32 }
 0x10b   :  { %420 = vpow2.f32 %v345_v33 }
 0x116   :  { %v419_v34 = vpop.eup %418 }
 0x117   :  { %v196_v35 = vadd.f32 1.0, %v419_v34 }
 0x118   :  { %v421_v36 = vpop.eup %420 }
 0x119   :  { %422 = vrcp.f32 %v196_v35  ;;  %v195_v37 = vadd.f32 1.0, %v421_v36 }
 0x11b   :  { %424 = vrcp.f32 %v195_v37 }
 0x126   :  { %v423_v38 = vpop.eup %422 }
 0x127   :  { %406 = vmatpush3.msra.mxu1 %v423_v38 }
 0x128   :  { %v425_v40 = vpop.eup %424  ;;  %407 = vmatprep.subr.mxu1 %v453_v23 }
 0x129   :  { %408 = vmatpush3.msra.mxu1 %v425_v40 }
 0x12a   :  { %410 = vmatmul.mubr.msk.f32.vlgmr.msra.gmra.mxu1 %vm208_vm2, %v201_v39 }
 0x1ea   :  { %v278_v42 = vpop.f32.mrf.mxu1 }
 0x1eb   :  { %v279_v43 = vadd.f32 %v278_v42, %v206_v41 }
 0x1ec   :  { %v411_v44 = vpop.f32.mrf.mxu1 }
 0x1ed   :  { %v348_v45 = vmul.f32 -1.442695, %v279_v43 }
 0x1ef   :  { %426 = vpow2.f32 %v348_v45 }
 0x1fc   :  { %v427_v46 = vpop.eup %426 }
 0x1fd   :  { %v285_v47 = vadd.f32 1.0, %v427_v46 }
 0x1ff   :  { %428 = vrcp.f32 %v285_v47 }
 0x20c   :  { %v429_v48 = vpop.eup %428 }
 0x20d   :  { %v294_v51 = vmul.f32 %v429_v48, %v292_v49 }
 0x20f   :  { %v295_v52 = vrot.slane %v294_v51, 4 }
 0x211   :  { %v296_v54 = vadd.f32 %v295_v52, %v294_v51 }
 0x213   :  { %v297_v55 = vrot.slane %v296_v54, 2 }
 0x215   :  { %v298_v57 = vadd.f32 %v297_v55, %v296_v54 }
 0x217   :  { %v299_v59 = vrot.slane %v298_v57, 1 }
 0x219   :  { %v300_v61 = vadd.f32 %v299_v59, %v298_v57 }
 0x21b   :  { %v311_v62 = vadd.f32 %v310_v60, %v300_v61 }
 0x21d   :  { %312 = vst [vmem:[#allocation3] sm:$0x1] %v311_v62 }
 0x21e   :  { %441 = shalt.err (!%p438_p4)
}
 0x21f   :  { %322 = dma.vmem_to_hbm [thread:$0]  %s320_s5, 16, %s612_s7, [#allocation4]  }
 0x220   :  { %450 = dma.done.wait [#allocation4], 16  }
 0x221   :  { %451 = vsyncadd [#allocation4], 4294967280 }
 0x222   :  { %326 = vsyncpa [#allocation4], 1 }

// kernel: tpu_custom_call.1
= control target key start
LH: loop header
LB: loop body
LE: loop exit
PB: predicated region body
PF: predicated region fallthrough
CT: control target
= control target key end

     0   :  { %s605_s0 = inlined_call_operand.vmem [shape: f32[128,32], index: 0, kind: input, shape index: {}]   ;;  %s606_s1 = inlined_call_operand.vmem [shape: f32[16,32], index: 1, kind: input, shape index: {}]   ;;  %s607_s2 = inlined_call_operand.vmem [shape: f32[16,1], index: 2, kind: input, shape index: {}]   ;;  %s608_s3 = inlined_call_operand.vmem [shape: f32[8,16], index: 3, kind: input, shape index: {}]   ;;  %s609_s4 = inlined_call_operand.vmem [shape: f32[8,1], index: 4, kind: input, shape index: {}]   ;;  %s610_s5 = inlined_call_operand.vmem [shape: f32[8,1], index: 5, kind: input, shape index: {}]   ;;  %s611_s6 = inlined_call_operand.<no memory space> [shape: f32[1,1], index: 6, kind: input, shape index: {}]   ;;  %s612_s7 = inlined_call_operand.hbm [shape: f32[1,128], index: 7, kind: output, shape index: {}]  }
   0x1   :  { %v12_v0 = vstv %s611_s6 }
   0x2   :  { %13 = vst [vmem:[#allocation2] sm:$0x1] %v12_v0 }
   0x3   :  { %v46_v1 = vld [vmem:[%s605_s0 + $0x78] sm:$0xff]  ;;  %vm59_vm0 = vcmask 261120   ;;  %v45_v2 = vld [vmem:[%s605_s0 + $0x70] sm:$0xff]  ;;  %v452_v3 = vmov 0   ;;  %v44_v4 = vld [vmem:[%s605_s0 + $0x68] sm:$0xff] }
   0x4   :  { %370 = vmatprep.subr.msk.mxu0 %vm59_vm0, %v46_v1  ;;  %416 = vset.pattern.permute.xlu0 %v452_v3  ;;  %v29_v5 = vld [vmem:[%s606_s1] sm:$0xff]  ;;  %v48_v6 = vld [vmem:[%s607_s2 + $0x8] sm:$0xff] }
   0x5   :  { %371 = vmatpush3.xpose.msk.msra.mxu0 %vm59_vm0, %v46_v1  ;;  %417 = vset.pattern.permute.xlu1 %v452_v3 }
   0x6   :  { %372 = vmatprep.subr.msk.mxu0 %vm59_vm0, %v45_v2  ;;  %402 = vmatprep.mubr.msk.f32.mxu0 %vm59_vm0, %v29_v5 }
   0x7   :  { %56 = vperm.xlu0 %416, %v48_v6  }
   0x9   :  { %373 = vmatpush3.xpose.msk.msra.mxu0 %vm59_vm0, %v45_v2 }
   0xa   :  { %374 = vmatprep.subr.msk.mxu0 %vm59_vm0, %v44_v4 }
   0xb   :  { %14 = vsyncpa [#allocation4], 0  ;;  %v43_v7 = vld [vmem:[%s605_s0 + $0x60] sm:$0xff]  ;;  %v42_v9 = vld [vmem:[%s605_s0 + $0x58] sm:$0xff]  ;;  %v453_v23 = vmov 0.0   ;;  %vm454_vm1 = vmmov 0   ;;  %v307_v50 = vlaneseq }
   0xc   :  { %v47_v8 = vld [vmem:[%s607_s2] sm:$0xff]  ;;  %v41_v11 = vld [vmem:[%s605_s0 + $0x50] sm:$0xff]  ;;  %v40_v12 = vld [vmem:[%s605_s0 + $0x48] sm:$0xff]  ;;  %405 = vmatprep.subr.mxu1 %v453_v23  ;;  %409 = vmatprep.mubr.msk.f32.mxu1 %vm454_vm1, %v453_v23  ;;  %vm208_vm2 = vcmask 130048  }
   0xd   :  { %375 = vmatpush3.xpose.msk.msra.mxu0 %vm59_vm0, %v44_v4  ;;  %51 = vperm.xlu0 %416, %v47_v8   ;;  %v301_v10 = vld [vmem:[#allocation2] sm:$0x1]  ;;  %v38_v14 = vld [vmem:[%s605_s0 + $0x38] sm:$0xff]  ;;  %v37_v15 = vld [vmem:[%s605_s0 + $0x30] sm:$0xff]  ;;  %v308_v53 = vshrl.u32 %v307_v50, 7 }
   0xe   :  { %376 = vmatprep.subr.msk.mxu0 %vm59_vm0, %v43_v7  ;;  %v39_v13 = vld [vmem:[%s605_s0 + $0x40] sm:$0xff]  ;;  %v36_v16 = vld [vmem:[%s605_s0 + $0x28] sm:$0xff]  ;;  %v34_v18 = vld [vmem:[%s605_s0 + $0x18] sm:$0xff] }
   0xf   :  { %v35_v17 = vld [vmem:[%s605_s0 + $0x20] sm:$0xff]  ;;  %v33_v19 = vld [vmem:[%s605_s0 + $0x10] sm:$0xff]  ;;  %v32_v20 = vld [vmem:[%s605_s0 + $0x8] sm:$0xff]  ;;  %v309_v56 = vsub.s32 0, %v308_v53 }
  0x10   :  { %v31_v21 = vld [vmem:[%s605_s0] sm:$0xff]  ;;  %v30_v22 = vld [vmem:[%s606_s1 + $0x8] sm:$0xff] }
  0x11   :  { %377 = vmatpush3.xpose.msk.msra.mxu0 %vm59_vm0, %v43_v7  ;;  %304 = vperm.xlu0 %416, %v301_v10   ;;  %v202_v24 = vld [vmem:[%s609_s4] sm:$0xff] }
  0x12   :  { %378 = vmatprep.subr.msk.mxu0 %vm59_vm0, %v42_v9  ;;  %205 = vperm.xlu1 %417, %v202_v24   ;;  %v288_v25 = vld [vmem:[%s610_s5] sm:$0xff] }
  0x13   :  { %v201_v39 = vld [vmem:[%s608_s3] sm:$0xff]  ;;  %s455_s3 = smov [#allocation3]  }
  0x14   :  { %s319_s5 = sshll.u32 %s455_s3, 4  ;;  %s320_s5 = int_to_ptr.vmem [resolvable:$true] %s319_s5 }
  0x15   :  { %379 = vmatpush3.xpose.msk.msra.mxu0 %vm59_vm0, %v42_v9  ;;  %s430_s2 = scalar_lea.vmem %s320_s5, 16  ;;  %s434_s20 = scalar_lea.vmem %s320_s5, 32 }
  0x16   :  { %380 = vmatprep.subr.msk.mxu0 %vm59_vm0, %v41_v11  ;;  %291 = vperm.xlu1 %417, %v288_v25   ;;  %p431_p0 = scmp.ne.s32.totalorder %s320_s5, %s430_s2  ;;  %p435_p1 = scmp.lt.s32.totalorder %s320_s5, %s320_s5 }
  0x17   :  { %p436_p2 = scmp.lt.s32.totalorder %s434_s20, %s430_s2 }
  0x19   :  { %381 = vmatpush3.xpose.msk.msra.mxu0 %vm59_vm0, %v41_v11  ;;  %p437_p3 = por %p436_p2, %p435_p1 }
  0x1a   :  { %382 = vmatprep.subr.msk.mxu0 %vm59_vm0, %v40_v12 }
  0x1b   :  { %p438_p4 = pnand %p437_p3, %p431_p0 }
  0x1d   :  { %383 = vmatpush3.xpose.msk.msra.mxu0 %vm59_vm0, %v40_v12 }
  0x1e   :  { %384 = vmatprep.subr.msk.mxu0 %vm59_vm0, %v39_v13 }
  0x21   :  { %385 = vmatpush3.xpose.msk.msra.mxu0 %vm59_vm0, %v39_v13 }
  0x22   :  { %386 = vmatprep.subr.msk.mxu0 %vm59_vm0, %v38_v14 }
  0x25   :  { %387 = vmatpush3.xpose.msk.msra.mxu0 %vm59_vm0, %v38_v14 }
  0x26   :  { %388 = vmatprep.subr.msk.mxu0 %vm59_vm0, %v37_v15 }
  0x29   :  { %389 = vmatpush3.xpose.msk.msra.mxu0 %vm59_vm0, %v37_v15 }
  0x2a   :  { %390 = vmatprep.subr.msk.mxu0 %vm59_vm0, %v36_v16 }
  0x2d   :  { %391 = vmatpush3.xpose.msk.msra.mxu0 %vm59_vm0, %v36_v16 }
  0x2e   :  { %392 = vmatprep.subr.msk.mxu0 %vm59_vm0, %v35_v17 }
  0x31   :  { %393 = vmatpush3.xpose.msk.msra.mxu0 %vm59_vm0, %v35_v17 }
  0x32   :  { %394 = vmatprep.subr.msk.mxu0 %vm59_vm0, %v34_v18 }
  0x35   :  { %395 = vmatpush3.xpose.msk.msra.mxu0 %vm59_vm0, %v34_v18 }
  0x36   :  { %396 = vmatprep.subr.msk.mxu0 %vm59_vm0, %v33_v19 }
  0x39   :  { %397 = vmatpush3.xpose.msk.msra.mxu0 %vm59_vm0, %v33_v19 }
  0x3a   :  { %398 = vmatprep.subr.msk.mxu0 %vm59_vm0, %v32_v20 }
  0x3d   :  { %399 = vmatpush3.xpose.msk.msra.mxu0 %vm59_vm0, %v32_v20 }
  0x3e   :  { %400 = vmatprep.subr.msk.mxu0 %vm59_vm0, %v31_v21 }
  0x41   :  { %401 = vmatpush3.xpose.msk.msra.mxu0 %vm59_vm0, %v31_v21 }
  0x44   :  { %403 = vmatmul.mubr.msk.f32.vlgmr.msra.gmra.mxu0 %vm59_vm0, %v30_v22 }
  0x82   :  { %v57_v26 = vpop.permute.xlu0 %56 }
  0x88   :  { %v52_v29 = vpop.permute.xlu0 %51 }
  0x8c   :  { %v305_v58 = vpop.permute.xlu0 %304 }
  0x8d   :  { %v206_v41 = vpop.permute.xlu1 %205  ;;  %v310_v60 = vrot.slane %v305_v58, %v309_v56 }
  0x91   :  { %v292_v49 = vpop.permute.xlu1 %291 }
 0x104   :  { %v404_v27 = vpop.f32.mrf.mxu0 }
 0x105   :  { %v186_v28 = vadd.f32 %v404_v27, %v57_v26 }
 0x106   :  { %v180_v30 = vpop.f32.mrf.mxu0 }
 0x107   :  { %v346_v31 = vmul.f32 -1.442695, %v186_v28  ;;  %v181_v32 = vadd.f32 %v180_v30, %v52_v29 }
 0x109   :  { %418 = vpow2.f32 %v346_v31  ;;  %v345_v33 = vmul.f32 -1.442695, %v181_v32 }
 0x10b   :  { %420 = vpow2.f32 %v345_v33 }
 0x116   :  { %v419_v34 = vpop.eup %418 }
 0x117   :  { %v196_v35 = vadd.f32 1.0, %v419_v34 }
 0x118   :  { %v421_v36 = vpop.eup %420 }
 0x119   :  { %422 = vrcp.f32 %v196_v35  ;;  %v195_v37 = vadd.f32 1.0, %v421_v36 }
 0x11b   :  { %424 = vrcp.f32 %v195_v37 }
 0x126   :  { %v423_v38 = vpop.eup %422 }
 0x127   :  { %406 = vmatpush3.msra.mxu1 %v423_v38 }
 0x128   :  { %v425_v40 = vpop.eup %424  ;;  %407 = vmatprep.subr.mxu1 %v453_v23 }
 0x129   :  { %408 = vmatpush3.msra.mxu1 %v425_v40 }
 0x12a   :  { %410 = vmatmul.mubr.msk.f32.vlgmr.msra.gmra.mxu1 %vm208_vm2, %v201_v39 }
 0x1ea   :  { %v278_v42 = vpop.f32.mrf.mxu1 }
 0x1eb   :  { %v279_v43 = vadd.f32 %v278_v42, %v206_v41 }
 0x1ec   :  { %v411_v44 = vpop.f32.mrf.mxu1 }
 0x1ed   :  { %v348_v45 = vmul.f32 -1.442695, %v279_v43 }
 0x1ef   :  { %426 = vpow2.f32 %v348_v45 }
 0x1fc   :  { %v427_v46 = vpop.eup %426 }
 0x1fd   :  { %v285_v47 = vadd.f32 1.0, %v427_v46 }
 0x1ff   :  { %428 = vrcp.f32 %v285_v47 }
 0x20c   :  { %v429_v48 = vpop.eup %428 }
 0x20d   :  { %v294_v51 = vmul.f32 %v429_v48, %v292_v49 }
 0x20f   :  { %v295_v52 = vrot.slane %v294_v51, 4 }
 0x211   :  { %v296_v54 = vadd.f32 %v295_v52, %v294_v51 }
 0x213   :  { %v297_v55 = vrot.slane %v296_v54, 2 }
 0x215   :  { %v298_v57 = vadd.f32 %v297_v55, %v296_v54 }
 0x217   :  { %v299_v59 = vrot.slane %v298_v57, 1 }
 0x219   :  { %v300_v61 = vadd.f32 %v299_v59, %v298_v57 }
 0x21b   :  { %v311_v62 = vadd.f32 %v310_v60, %v300_v61 }
 0x21d   :  { %312 = vst [vmem:[#allocation3] sm:$0x1] %v311_v62 }
 0x21e   :  { %441 = shalt.err (!%p438_p4)
}
 0x21f   :  { %322 = dma.vmem_to_hbm [thread:$0]  %s320_s5, 16, %s612_s7, [#allocation4]  }
 0x220   :  { %450 = dma.done.wait [#allocation4], 16  }
 0x221   :  { %451 = vsyncadd [#allocation4], 4294967280 }
 0x222   :  { %326 = vsyncpa [#allocation4], 1 }

</bundles_post_ra>
